<compile_context>
chip_gen: v7x
topology: tpu7x:2x2x1
jax: 0.10.0
libtpu: 0.0.40
codegen_flags: <defaults>
</compile_context>

<pallas_src>
import math
from functools import partial

import jax
import jax.numpy as jnp
from jax.experimental import pallas as pl
from jax.experimental.pallas import tpu as pltpu


# ---------------------------------------------------------------------------
# Fused kernel: projections + per-head attention + concat + output linear.
# One grid step per batch element.
# ---------------------------------------------------------------------------
def _mha_fused_kernel(*refs, num_heads, head_dim, has_mask):
    if has_mask:
        (q_ref, k_ref, v_ref, mask_ref,
         wq_ref, bq_ref, wk_ref, bk_ref, wv_ref, bv_ref,
         wo_ref, bo_ref, out_ref) = refs
    else:
        (q_ref, k_ref, v_ref,
         wq_ref, bq_ref, wk_ref, bk_ref, wv_ref, bv_ref,
         wo_ref, bo_ref, out_ref) = refs
        mask_ref = None

    x_q = q_ref[0]          # (S, E)
    x_k = k_ref[0]          # (S, E)
    x_v = v_ref[0]          # (S, E)

    # Full-width projections: one (S,E)x(E,E) matmul each (all heads at once).
    # The 1/sqrt(head_dim) scale is pre-folded into wq/bq by the wrapper.
    q = jnp.dot(x_q, wq_ref[...], preferred_element_type=jnp.float32) + bq_ref[...]
    k = jnp.dot(x_k, wk_ref[...], preferred_element_type=jnp.float32) + bk_ref[...]
    v = jnp.dot(x_v, wv_ref[...], preferred_element_type=jnp.float32) + bv_ref[...]

    if has_mask:
        mask = mask_ref[0]                   # (S, S)
        # Large finite negative instead of -inf: identical softmax result for
        # partially-masked rows, avoids NaN if a row is ever fully masked.
        neg = jnp.float32(-1e30)

    # Static unroll over heads (H is a compile-time constant); head slices are
    # static lane offsets into the dense (S, E) projections.
    head_outs = []
    for h in range(num_heads):
        sl = slice(h * head_dim, (h + 1) * head_dim)
        q_h = q[:, sl]                       # (S, D)
        k_h = k[:, sl]
        v_h = v[:, sl]

        scores = jnp.dot(q_h, k_h.T, preferred_element_type=jnp.float32)  # (S, S)
        if has_mask:
            scores = jnp.where(mask == 0, neg, scores)

        # softmax along last axis (matches F.softmax(scores, dim=-1))
        m = jnp.max(scores, axis=-1, keepdims=True)
        e = jnp.exp(scores - m)
        denom = jnp.sum(e, axis=-1, keepdims=True)
        w = e * pl.reciprocal(denom, approx=True)          # EUP reciprocal

        head_outs.append(jnp.dot(w, v_h, preferred_element_type=jnp.float32))

    # Concat heads along the lane axis -> (S, H*D = E), then output linear.
    ctx = jnp.concatenate(head_outs, axis=-1)              # (S, E)
    out_ref[0] = (jnp.dot(ctx, wo_ref[...], preferred_element_type=jnp.float32)
                  + bo_ref[...])


def multi_head_attention(query, key, value, params,
                         query_mask=None, key_mask=None, mask=None):
    """Pallas implementation of MultiHeadAttention.forward.

    query/key/value: (B, S, E) float32
    params (same layout as the per-head nn.Linear stack of the PyTorch module):
        wq, wk, wv : (H, E, D)   (already transposed so y = x @ W + b)
        bq, bk, bv : (H, 1, D)
        wo         : (E, E)
        bo         : (1, E)
    masks follow the PyTorch semantics (nonzero = keep, 0 = masked).
    """
    B, S, E = query.shape
    H, _, D = params["wq"].shape
    assert H * D == E

    # ---- trace-time glue: stack per-head weights into dense (E, E) mats ----
    def dense_w(w):        # (H, E, D) -> (E, H*D), head h occupies cols [h*D:(h+1)*D]
        return jnp.transpose(w, (1, 0, 2)).reshape(E, H * D)

    def dense_b(b):        # (H, 1, D) -> (1, H*D)
        return jnp.transpose(b, (1, 0, 2)).reshape(1, H * D)

    scale = 1.0 / math.sqrt(D)
    wq = dense_w(params["wq"]) * scale      # fold 1/sqrt(D) into the q projection
    bq = dense_b(params["bq"]) * scale
    wk = dense_w(params["wk"])
    bk = dense_b(params["bk"])
    wv = dense_w(params["wv"])
    bv = dense_b(params["bv"])
    wo = params["wo"]
    bo = params["bo"]

    # ---- mask construction (same as torch.bmm(qm.unsqueeze(-1), km.unsqueeze(1)))
    if query_mask is not None and key_mask is not None:
        mask = jnp.einsum("bq,bk->bqk", query_mask.astype(jnp.float32),
                          key_mask.astype(jnp.float32))
    has_mask = mask is not None

    kernel = partial(_mha_fused_kernel, num_heads=H, head_dim=D,
                     has_mask=has_mask)

    in_specs = [
        pl.BlockSpec((1, S, E), lambda b: (b, 0, 0)),   # query
        pl.BlockSpec((1, S, E), lambda b: (b, 0, 0)),   # key
        pl.BlockSpec((1, S, E), lambda b: (b, 0, 0)),   # value
    ]
    args = [query, key, value]
    if has_mask:
        in_specs.append(pl.BlockSpec((1, S, S), lambda b: (b, 0, 0)))
        args.append(mask.astype(jnp.float32))
    in_specs += [
        pl.BlockSpec((E, E), lambda b: (0, 0)),         # wq (scaled)
        pl.BlockSpec((1, E), lambda b: (0, 0)),         # bq (scaled)
        pl.BlockSpec((E, E), lambda b: (0, 0)),         # wk
        pl.BlockSpec((1, E), lambda b: (0, 0)),         # bk
        pl.BlockSpec((E, E), lambda b: (0, 0)),         # wv
        pl.BlockSpec((1, E), lambda b: (0, 0)),         # bv
        pl.BlockSpec((E, E), lambda b: (0, 0)),         # wo
        pl.BlockSpec((1, E), lambda b: (0, 0)),         # bo
    ]
    args += [wq, bq, wk, bk, wv, bv, wo, bo]

    # Advisory cost estimate for XLA scheduling around the custom call.
    flops = 2 * B * (4 * S * E * E + 2 * S * S * E)
    transcendentals = B * H * S * S
    bytes_accessed = 4 * (4 * B * S * E + (B * S * S if has_mask else 0)
                          + 4 * E * E + 4 * E)
    cost = pl.CostEstimate(flops=flops, transcendentals=transcendentals,
                           bytes_accessed=bytes_accessed)

    return pl.pallas_call(
        kernel,
        out_shape=jax.ShapeDtypeStruct((B, S, E), jnp.float32),
        grid_spec=pltpu.PrefetchScalarGridSpec(
            num_scalar_prefetch=0,
            grid=(B,),
            in_specs=in_specs,
            out_specs=pl.BlockSpec((1, S, E), lambda b: (b, 0, 0)),
        ),
        compiler_params=pltpu.CompilerParams(
            dimension_semantics=("parallel",)),     # megacore-shardable on v7x
        cost_estimate=cost,
    )(*args)


def _init_params(hidden_size, num_heads, key):
    head_dim = hidden_size // num_heads
    keys = jax.random.split(key, 8)
    s = 0.1
    return {
        "wq": s * jax.random.normal(keys[0], (num_heads, hidden_size, head_dim), jnp.float32),
        "bq": s * jax.random.normal(keys[1], (num_heads, 1, head_dim), jnp.float32),
        "wk": s * jax.random.normal(keys[2], (num_heads, hidden_size, head_dim), jnp.float32),
        "bk": s * jax.random.normal(keys[3], (num_heads, 1, head_dim), jnp.float32),
        "wv": s * jax.random.normal(keys[4], (num_heads, hidden_size, head_dim), jnp.float32),
        "bv": s * jax.random.normal(keys[5], (num_heads, 1, head_dim), jnp.float32),
        "wo": s * jax.random.normal(keys[6], (hidden_size, hidden_size), jnp.float32),
        "bo": s * jax.random.normal(keys[7], (1, hidden_size), jnp.float32),
    }


if __name__ == "__main__":
    # config: hidden_size=32, num_attention_heads=4 -> head_dim=8
    B, S, E, H = 2, 8, 32, 4

    key = jax.random.PRNGKey(0)
    k_q, k_k, k_v, k_p = jax.random.split(key, 4)
    query = jax.random.normal(k_q, (B, S, E), jnp.float32)
    key_in = jax.random.normal(k_k, (B, S, E), jnp.float32)
    value = jax.random.normal(k_v, (B, S, E), jnp.float32)

    params = _init_params(E, H, k_p)

    # Unmasked path (mask branch skipped entirely at trace time).
    out = multi_head_attention(query, key_in, value, params)
    jax.block_until_ready(out)
    assert out.shape == (B, S, E)
    assert bool(jnp.all(jnp.isfinite(out)))

    # Masked path (padding masks, PyTorch query_mask/key_mask semantics).
    qm = jnp.ones((B, S), jnp.float32)
    km = jnp.ones((B, S), jnp.float32).at[:, S - 2:].set(0.0)
    out_m = multi_head_attention(query, key_in, value, params,
                                 query_mask=qm, key_mask=km)
    jax.block_until_ready(out_m)
    assert out_m.shape == (B, S, E)
    assert bool(jnp.all(jnp.isfinite(out_m)))

    print("KERNEL_OK")
</pallas_src>

<mosaic_0001>
module attributes {stable_mosaic.version = 11 : i64} {
  func.func @_mha_fused_kernel(%arg0: i32, %arg1: memref<1x8x32xf32, #tpu.memory_space<vmem>>, %arg2: memref<1x8x32xf32, #tpu.memory_space<vmem>>, %arg3: memref<1x8x32xf32, #tpu.memory_space<vmem>>, %arg4: memref<32x32xf32, #tpu.memory_space<vmem>>, %arg5: memref<1x32xf32, #tpu.memory_space<vmem>>, %arg6: memref<32x32xf32, #tpu.memory_space<vmem>>, %arg7: memref<1x32xf32, #tpu.memory_space<vmem>>, %arg8: memref<32x32xf32, #tpu.memory_space<vmem>>, %arg9: memref<1x32xf32, #tpu.memory_space<vmem>>, %arg10: memref<32x32xf32, #tpu.memory_space<vmem>>, %arg11: memref<1x32xf32, #tpu.memory_space<vmem>>, %arg12: memref<1x8x32xf32, #tpu.memory_space<vmem>>) attributes {dimension_semantics = [#tpu.dimension_semantics<parallel>], iteration_bounds = array<i64: 2>, scalar_prefetch = 0 : i64, scratch_operands = 0 : i64, tpu.core_type = #tpu.core_type<tc>, window_params = [{transform_indices = @transform_0, window_bounds = array<i64: 1, 8, 32>}, {transform_indices = @transform_1, window_bounds = array<i64: 1, 8, 32>}, {transform_indices = @transform_2, window_bounds = array<i64: 1, 8, 32>}, {pipeline_mode = #tpu.pipeline_mode<synchronous>, transform_indices = @transform_3, window_bounds = array<i64: 32, 32>}, {pipeline_mode = #tpu.pipeline_mode<synchronous>, transform_indices = @transform_4, window_bounds = array<i64: 1, 32>}, {pipeline_mode = #tpu.pipeline_mode<synchronous>, transform_indices = @transform_5, window_bounds = array<i64: 32, 32>}, {pipeline_mode = #tpu.pipeline_mode<synchronous>, transform_indices = @transform_6, window_bounds = array<i64: 1, 32>}, {pipeline_mode = #tpu.pipeline_mode<synchronous>, transform_indices = @transform_7, window_bounds = array<i64: 32, 32>}, {pipeline_mode = #tpu.pipeline_mode<synchronous>, transform_indices = @transform_8, window_bounds = array<i64: 1, 32>}, {pipeline_mode = #tpu.pipeline_mode<synchronous>, transform_indices = @transform_9, window_bounds = array<i64: 32, 32>}, {pipeline_mode = #tpu.pipeline_mode<synchronous>, transform_indices = @transform_10, window_bounds = array<i64: 1, 32>}, {transform_indices = @transform_11, window_bounds = array<i64: 1, 8, 32>}]} {
    %c0 = arith.constant 0 : index
    %c0_0 = arith.constant 0 : index
    %c0_1 = arith.constant 0 : index
    %0 = vector.load %arg1[%c0, %c0_0, %c0_1] : memref<1x8x32xf32, #tpu.memory_space<vmem>>, vector<1x8x32xf32>
    %1 = vector.shape_cast %0 : vector<1x8x32xf32> to vector<8x32xf32>
    %c0_2 = arith.constant 0 : index
    %c0_3 = arith.constant 0 : index
    %c0_4 = arith.constant 0 : index
    %2 = vector.load %arg2[%c0_2, %c0_3, %c0_4] : memref<1x8x32xf32, #tpu.memory_space<vmem>>, vector<1x8x32xf32>
    %3 = vector.shape_cast %2 : vector<1x8x32xf32> to vector<8x32xf32>
    %c0_5 = arith.constant 0 : index
    %c0_6 = arith.constant 0 : index
    %c0_7 = arith.constant 0 : index
    %4 = vector.load %arg3[%c0_5, %c0_6, %c0_7] : memref<1x8x32xf32, #tpu.memory_space<vmem>>, vector<1x8x32xf32>
    %5 = vector.shape_cast %4 : vector<1x8x32xf32> to vector<8x32xf32>
    %c0_8 = arith.constant 0 : index
    %c0_9 = arith.constant 0 : index
    %6 = vector.load %arg4[%c0_8, %c0_9] : memref<32x32xf32, #tpu.memory_space<vmem>>, vector<32x32xf32>
    %cst = arith.constant dense<0.000000e+00> : vector<8x32xf32>
    %7 = tpu.matmul %1, %6, %cst {dimension_numbers = #tpu.dot_dimension_numbers<[1], [0], [0], [1], [0, 0, 1, 1], [], []>} : vector<8x32xf32>, vector<32x32xf32>, vector<8x32xf32> -> vector<8x32xf32>
    %c0_10 = arith.constant 0 : index
    %c0_11 = arith.constant 0 : index
    %8 = vector.load %arg5[%c0_10, %c0_11] : memref<1x32xf32, #tpu.memory_space<vmem>>, vector<1x32xf32>
    %9 = vector.broadcast %8 : vector<1x32xf32> to vector<8x32xf32>
    %10 = arith.addf %7, %9 : vector<8x32xf32>
    %c0_12 = arith.constant 0 : index
    %c0_13 = arith.constant 0 : index
    %11 = vector.load %arg6[%c0_12, %c0_13] : memref<32x32xf32, #tpu.memory_space<vmem>>, vector<32x32xf32>
    %cst_14 = arith.constant dense<0.000000e+00> : vector<8x32xf32>
    %12 = tpu.matmul %3, %11, %cst_14 {dimension_numbers = #tpu.dot_dimension_numbers<[1], [0], [0], [1], [0, 0, 1, 1], [], []>} : vector<8x32xf32>, vector<32x32xf32>, vector<8x32xf32> -> vector<8x32xf32>
    %c0_15 = arith.constant 0 : index
    %c0_16 = arith.constant 0 : index
    %13 = vector.load %arg7[%c0_15, %c0_16] : memref<1x32xf32, #tpu.memory_space<vmem>>, vector<1x32xf32>
    %14 = vector.broadcast %13 : vector<1x32xf32> to vector<8x32xf32>
    %15 = arith.addf %12, %14 : vector<8x32xf32>
    %c0_17 = arith.constant 0 : index
    %c0_18 = arith.constant 0 : index
    %16 = vector.load %arg8[%c0_17, %c0_18] : memref<32x32xf32, #tpu.memory_space<vmem>>, vector<32x32xf32>
    %cst_19 = arith.constant dense<0.000000e+00> : vector<8x32xf32>
    %17 = tpu.matmul %5, %16, %cst_19 {dimension_numbers = #tpu.dot_dimension_numbers<[1], [0], [0], [1], [0, 0, 1, 1], [], []>} : vector<8x32xf32>, vector<32x32xf32>, vector<8x32xf32> -> vector<8x32xf32>
    %c0_20 = arith.constant 0 : index
    %c0_21 = arith.constant 0 : index
    %18 = vector.load %arg9[%c0_20, %c0_21] : memref<1x32xf32, #tpu.memory_space<vmem>>, vector<1x32xf32>
    %19 = vector.broadcast %18 : vector<1x32xf32> to vector<8x32xf32>
    %20 = arith.addf %17, %19 : vector<8x32xf32>
    %21 = vector.extract_strided_slice %10 {offsets = [0, 0], sizes = [8, 8], strides = [1, 1]} : vector<8x32xf32> to vector<8x8xf32>
    %22 = vector.extract_strided_slice %15 {offsets = [0, 0], sizes = [8, 8], strides = [1, 1]} : vector<8x32xf32> to vector<8x8xf32>
    %23 = vector.extract_strided_slice %20 {offsets = [0, 0], sizes = [8, 8], strides = [1, 1]} : vector<8x32xf32> to vector<8x8xf32>
    %24 = tpu.transpose %22, [1, 0] : vector<8x8xf32> -> vector<8x8xf32>
    %cst_22 = arith.constant dense<0.000000e+00> : vector<8x8xf32>
    %25 = tpu.matmul %21, %24, %cst_22 {dimension_numbers = #tpu.dot_dimension_numbers<[1], [0], [0], [1], [0, 0, 1, 1], [], []>} : vector<8x8xf32>, vector<8x8xf32>, vector<8x8xf32> -> vector<8x8xf32>
    %cst_23 = arith.constant dense<0xFF800000> : vector<8xf32>
    %26 = vector.multi_reduction <maximumf>, %25, %cst_23 [1] : vector<8x8xf32> to vector<8xf32>
    %27 = vector.shape_cast %26 : vector<8xf32> to vector<8x1xf32>
    %28 = vector.broadcast %27 : vector<8x1xf32> to vector<8x8xf32>
    %29 = arith.subf %25, %28 : vector<8x8xf32>
    %30 = math.exp %29 : vector<8x8xf32>
    %cst_24 = arith.constant dense<0.000000e+00> : vector<8xf32>
    %31 = vector.multi_reduction <add>, %30, %cst_24 [1] : vector<8x8xf32> to vector<8xf32>
    %32 = vector.shape_cast %31 : vector<8xf32> to vector<8x1xf32>
    %33 = tpu.reciprocal %32 {approx = true} : vector<8x1xf32> -> vector<8x1xf32>
    %34 = vector.broadcast %33 : vector<8x1xf32> to vector<8x8xf32>
    %35 = arith.mulf %30, %34 : vector<8x8xf32>
    %cst_25 = arith.constant dense<0.000000e+00> : vector<8x8xf32>
    %36 = tpu.matmul %35, %23, %cst_25 {dimension_numbers = #tpu.dot_dimension_numbers<[1], [0], [0], [1], [0, 0, 1, 1], [], []>} : vector<8x8xf32>, vector<8x8xf32>, vector<8x8xf32> -> vector<8x8xf32>
    %37 = vector.extract_strided_slice %10 {offsets = [0, 8], sizes = [8, 8], strides = [1, 1]} : vector<8x32xf32> to vector<8x8xf32>
    %38 = vector.extract_strided_slice %15 {offsets = [0, 8], sizes = [8, 8], strides = [1, 1]} : vector<8x32xf32> to vector<8x8xf32>
    %39 = vector.extract_strided_slice %20 {offsets = [0, 8], sizes = [8, 8], strides = [1, 1]} : vector<8x32xf32> to vector<8x8xf32>
    %40 = tpu.transpose %38, [1, 0] : vector<8x8xf32> -> vector<8x8xf32>
    %cst_26 = arith.constant dense<0.000000e+00> : vector<8x8xf32>
    %41 = tpu.matmul %37, %40, %cst_26 {dimension_numbers = #tpu.dot_dimension_numbers<[1], [0], [0], [1], [0, 0, 1, 1], [], []>} : vector<8x8xf32>, vector<8x8xf32>, vector<8x8xf32> -> vector<8x8xf32>
    %cst_27 = arith.constant dense<0xFF800000> : vector<8xf32>
    %42 = vector.multi_reduction <maximumf>, %41, %cst_27 [1] : vector<8x8xf32> to vector<8xf32>
    %43 = vector.shape_cast %42 : vector<8xf32> to vector<8x1xf32>
    %44 = vector.broadcast %43 : vector<8x1xf32> to vector<8x8xf32>
    %45 = arith.subf %41, %44 : vector<8x8xf32>
    %46 = math.exp %45 : vector<8x8xf32>
    %cst_28 = arith.constant dense<0.000000e+00> : vector<8xf32>
    %47 = vector.multi_reduction <add>, %46, %cst_28 [1] : vector<8x8xf32> to vector<8xf32>
    %48 = vector.shape_cast %47 : vector<8xf32> to vector<8x1xf32>
    %49 = tpu.reciprocal %48 {approx = true} : vector<8x1xf32> -> vector<8x1xf32>
    %50 = vector.broadcast %49 : vector<8x1xf32> to vector<8x8xf32>
    %51 = arith.mulf %46, %50 : vector<8x8xf32>
    %cst_29 = arith.constant dense<0.000000e+00> : vector<8x8xf32>
    %52 = tpu.matmul %51, %39, %cst_29 {dimension_numbers = #tpu.dot_dimension_numbers<[1], [0], [0], [1], [0, 0, 1, 1], [], []>} : vector<8x8xf32>, vector<8x8xf32>, vector<8x8xf32> -> vector<8x8xf32>
    %53 = vector.extract_strided_slice %10 {offsets = [0, 16], sizes = [8, 8], strides = [1, 1]} : vector<8x32xf32> to vector<8x8xf32>
    %54 = vector.extract_strided_slice %15 {offsets = [0, 16], sizes = [8, 8], strides = [1, 1]} : vector<8x32xf32> to vector<8x8xf32>
    %55 = vector.extract_strided_slice %20 {offsets = [0, 16], sizes = [8, 8], strides = [1, 1]} : vector<8x32xf32> to vector<8x8xf32>
    %56 = tpu.transpose %54, [1, 0] : vector<8x8xf32> -> vector<8x8xf32>
    %cst_30 = arith.constant dense<0.000000e+00> : vector<8x8xf32>
    %57 = tpu.matmul %53, %56, %cst_30 {dimension_numbers = #tpu.dot_dimension_numbers<[1], [0], [0], [1], [0, 0, 1, 1], [], []>} : vector<8x8xf32>, vector<8x8xf32>, vector<8x8xf32> -> vector<8x8xf32>
    %cst_31 = arith.constant dense<0xFF800000> : vector<8xf32>
    %58 = vector.multi_reduction <maximumf>, %57, %cst_31 [1] : vector<8x8xf32> to vector<8xf32>
    %59 = vector.shape_cast %58 : vector<8xf32> to vector<8x1xf32>
    %60 = vector.broadcast %59 : vector<8x1xf32> to vector<8x8xf32>
    %61 = arith.subf %57, %60 : vector<8x8xf32>
    %62 = math.exp %61 : vector<8x8xf32>
    %cst_32 = arith.constant dense<0.000000e+00> : vector<8xf32>
    %63 = vector.multi_reduction <add>, %62, %cst_32 [1] : vector<8x8xf32> to vector<8xf32>
    %64 = vector.shape_cast %63 : vector<8xf32> to vector<8x1xf32>
    %65 = tpu.reciprocal %64 {approx = true} : vector<8x1xf32> -> vector<8x1xf32>
    %66 = vector.broadcast %65 : vector<8x1xf32> to vector<8x8xf32>
    %67 = arith.mulf %62, %66 : vector<8x8xf32>
    %cst_33 = arith.constant dense<0.000000e+00> : vector<8x8xf32>
    %68 = tpu.matmul %67, %55, %cst_33 {dimension_numbers = #tpu.dot_dimension_numbers<[1], [0], [0], [1], [0, 0, 1, 1], [], []>} : vector<8x8xf32>, vector<8x8xf32>, vector<8x8xf32> -> vector<8x8xf32>
    %69 = vector.extract_strided_slice %10 {offsets = [0, 24], sizes = [8, 8], strides = [1, 1]} : vector<8x32xf32> to vector<8x8xf32>
    %70 = vector.extract_strided_slice %15 {offsets = [0, 24], sizes = [8, 8], strides = [1, 1]} : vector<8x32xf32> to vector<8x8xf32>
    %71 = vector.extract_strided_slice %20 {offsets = [0, 24], sizes = [8, 8], strides = [1, 1]} : vector<8x32xf32> to vector<8x8xf32>
    %72 = tpu.transpose %70, [1, 0] : vector<8x8xf32> -> vector<8x8xf32>
    %cst_34 = arith.constant dense<0.000000e+00> : vector<8x8xf32>
    %73 = tpu.matmul %69, %72, %cst_34 {dimension_numbers = #tpu.dot_dimension_numbers<[1], [0], [0], [1], [0, 0, 1, 1], [], []>} : vector<8x8xf32>, vector<8x8xf32>, vector<8x8xf32> -> vector<8x8xf32>
    %cst_35 = arith.constant dense<0xFF800000> : vector<8xf32>
    %74 = vector.multi_reduction <maximumf>, %73, %cst_35 [1] : vector<8x8xf32> to vector<8xf32>
    %75 = vector.shape_cast %74 : vector<8xf32> to vector<8x1xf32>
    %76 = vector.broadcast %75 : vector<8x1xf32> to vector<8x8xf32>
    %77 = arith.subf %73, %76 : vector<8x8xf32>
    %78 = math.exp %77 : vector<8x8xf32>
    %cst_36 = arith.constant dense<0.000000e+00> : vector<8xf32>
    %79 = vector.multi_reduction <add>, %78, %cst_36 [1] : vector<8x8xf32> to vector<8xf32>
    %80 = vector.shape_cast %79 : vector<8xf32> to vector<8x1xf32>
    %81 = tpu.reciprocal %80 {approx = true} : vector<8x1xf32> -> vector<8x1xf32>
    %82 = vector.broadcast %81 : vector<8x1xf32> to vector<8x8xf32>
    %83 = arith.mulf %78, %82 : vector<8x8xf32>
    %cst_37 = arith.constant dense<0.000000e+00> : vector<8x8xf32>
    %84 = tpu.matmul %83, %71, %cst_37 {dimension_numbers = #tpu.dot_dimension_numbers<[1], [0], [0], [1], [0, 0, 1, 1], [], []>} : vector<8x8xf32>, vector<8x8xf32>, vector<8x8xf32> -> vector<8x8xf32>
    %85 = tpu.concatenate %36, %52, %68, %84 in 1 : vector<8x8xf32>, vector<8x8xf32>, vector<8x8xf32>, vector<8x8xf32> -> vector<8x32xf32>
    %c0_38 = arith.constant 0 : index
    %c0_39 = arith.constant 0 : index
    %86 = vector.load %arg10[%c0_38, %c0_39] : memref<32x32xf32, #tpu.memory_space<vmem>>, vector<32x32xf32>
    %cst_40 = arith.constant dense<0.000000e+00> : vector<8x32xf32>
    %87 = tpu.matmul %85, %86, %cst_40 {dimension_numbers = #tpu.dot_dimension_numbers<[1], [0], [0], [1], [0, 0, 1, 1], [], []>} : vector<8x32xf32>, vector<32x32xf32>, vector<8x32xf32> -> vector<8x32xf32>
    %c0_41 = arith.constant 0 : index
    %c0_42 = arith.constant 0 : index
    %88 = vector.load %arg11[%c0_41, %c0_42] : memref<1x32xf32, #tpu.memory_space<vmem>>, vector<1x32xf32>
    %89 = vector.broadcast %88 : vector<1x32xf32> to vector<8x32xf32>
    %90 = arith.addf %87, %89 : vector<8x32xf32>
    %c0_43 = arith.constant 0 : index
    %c0_44 = arith.constant 0 : index
    %c0_45 = arith.constant 0 : index
    %91 = vector.load %arg12[%c0_43, %c0_44, %c0_45] : memref<1x8x32xf32, #tpu.memory_space<vmem>>, vector<1x8x32xf32>
    %92 = vector.shape_cast %91 : vector<1x8x32xf32> to vector<8x32xf32>
    %93 = vector.shape_cast %90 : vector<8x32xf32> to vector<1x8x32xf32>
    tpu.vector_store %arg12[%c0_43, %c0_44, %c0_45], %93 {strides = array<i32>} : memref<1x8x32xf32, #tpu.memory_space<vmem>>, vector<1x8x32xf32>,
    return
  }
  func.func @transform_0(%arg0: i32) -> (i32, i32, i32) {
    %c0_i32 = arith.constant 0 : i32
    %c0_i32_0 = arith.constant 0 : i32
    %c0_i32_1 = arith.constant 0 : i32
    return %arg0, %c0_i32, %c0_i32_0 : i32, i32, i32
  }
  func.func @transform_1(%arg0: i32) -> (i32, i32, i32) {
    %c0_i32 = arith.constant 0 : i32
    %c0_i32_0 = arith.constant 0 : i32
    %c0_i32_1 = arith.constant 0 : i32
    return %arg0, %c0_i32, %c0_i32_0 : i32, i32, i32
  }
  func.func @transform_2(%arg0: i32) -> (i32, i32, i32) {
    %c0_i32 = arith.constant 0 : i32
    %c0_i32_0 = arith.constant 0 : i32
    %c0_i32_1 = arith.constant 0 : i32
    return %arg0, %c0_i32, %c0_i32_0 : i32, i32, i32
  }
  func.func @transform_3(%arg0: i32) -> (i32, i32) {
    %c0_i32 = arith.constant 0 : i32
    %c0_i32_0 = arith.constant 0 : i32
    %c0_i32_1 = arith.constant 0 : i32
    return %c0_i32, %c0_i32_0 : i32, i32
  }
  func.func @transform_4(%arg0: i32) -> (i32, i32) {
    %c0_i32 = arith.constant 0 : i32
    %c0_i32_0 = arith.constant 0 : i32
    %c0_i32_1 = arith.constant 0 : i32
    return %c0_i32, %c0_i32_0 : i32, i32
  }
  func.func @transform_5(%arg0: i32) -> (i32, i32) {
    %c0_i32 = arith.constant 0 : i32
    %c0_i32_0 = arith.constant 0 : i32
    %c0_i32_1 = arith.constant 0 : i32
    return %c0_i32, %c0_i32_0 : i32, i32
  }
  func.func @transform_6(%arg0: i32) -> (i32, i32) {
    %c0_i32 = arith.constant 0 : i32
    %c0_i32_0 = arith.constant 0 : i32
    %c0_i32_1 = arith.constant 0 : i32
    return %c0_i32, %c0_i32_0 : i32, i32
  }
  func.func @transform_7(%arg0: i32) -> (i32, i32) {
    %c0_i32 = arith.constant 0 : i32
    %c0_i32_0 = arith.constant 0 : i32
    %c0_i32_1 = arith.constant 0 : i32
    return %c0_i32, %c0_i32_0 : i32, i32
  }
  func.func @transform_8(%arg0: i32) -> (i32, i32) {
    %c0_i32 = arith.constant 0 : i32
    %c0_i32_0 = arith.constant 0 : i32
    %c0_i32_1 = arith.constant 0 : i32
    return %c0_i32, %c0_i32_0 : i32, i32
  }
  func.func @transform_9(%arg0: i32) -> (i32, i32) {
    %c0_i32 = arith.constant 0 : i32
    %c0_i32_0 = arith.constant 0 : i32
    %c0_i32_1 = arith.constant 0 : i32
    return %c0_i32, %c0_i32_0 : i32, i32
  }
  func.func @transform_10(%arg0: i32) -> (i32, i32) {
    %c0_i32 = arith.constant 0 : i32
    %c0_i32_0 = arith.constant 0 : i32
    %c0_i32_1 = arith.constant 0 : i32
    return %c0_i32, %c0_i32_0 : i32, i32
  }
  func.func @transform_11(%arg0: i32) -> (i32, i32, i32) {
    %c0_i32 = arith.constant 0 : i32
    %c0_i32_0 = arith.constant 0 : i32
    %c0_i32_1 = arith.constant 0 : i32
    return %arg0, %c0_i32, %c0_i32_0 : i32, i32, i32
  }
}

</mosaic_0001>

<bundles_post_ra>
// kernel: tpu_custom_call.1
= control target key start
LH: loop header
LB: loop body
LE: loop exit
PB: predicated region body
PF: predicated region fallthrough
CT: control target
= control target key end

     0   :  { %s2850_s0 = inlined_call_operand.hbm [shape: f32[2,8,32], index: 0, kind: input, shape index: {}]   ;;  %s2851_s1 = inlined_call_operand.hbm [shape: f32[2,8,32], index: 1, kind: input, shape index: {}]   ;;  %s2852_s2 = inlined_call_operand.hbm [shape: f32[2,8,32], index: 2, kind: input, shape index: {}]   ;;  %s2853_s3 = inlined_call_operand.hbm [shape: f32[32,32], index: 3, kind: input, shape index: {}]   ;;  %s2854_s4 = inlined_call_operand.vmem [shape: f32[1,32], index: 4, kind: input, shape index: {}]   ;;  %s2855_s5 = inlined_call_operand.hbm [shape: f32[32,32], index: 5, kind: input, shape index: {}]   ;;  %s2856_s6 = inlined_call_operand.vmem [shape: f32[1,32], index: 6, kind: input, shape index: {}]   ;;  %s2857_s7 = inlined_call_operand.hbm [shape: f32[32,32], index: 7, kind: input, shape index: {}]   ;;  %s2858_s8 = inlined_call_operand.hbm [shape: f32[1,32], index: 8, kind: input, shape index: {}]   ;;  %s2859_s9 = inlined_call_operand.vmem [shape: f32[32,32], index: 9, kind: input, shape index: {}]   ;;  %s2860_s10 = inlined_call_operand.vmem [shape: f32[1,32], index: 10, kind: input, shape index: {}]   ;;  %s2861_s11 = inlined_call_operand.hbm [shape: f32[2,8,32], index: 11, kind: output, shape index: {}]  }
   0x1   :  { %2886 = sst [smem:[#allocation26_spill]] %s2851_s1 }
   0x2   :  { %2887 = sst [smem:[#allocation27_spill]] %s2853_s3 }
   0x3   :  { %2888 = sst [smem:[#allocation28_spill]] %s2854_s4 }
   0x4   :  { %2889 = sst [smem:[#allocation29_spill]] %s2857_s7 }
   0x5   :  { %2890 = sst [smem:[#allocation30_spill]] %s2859_s9 }
   0x6   :  { %2891 = sst [smem:[#allocation31_spill]] %s2860_s10 }
   0x7   :  { %2892 = sst [smem:[#allocation32_spill]] %s2861_s11 }
   0x8   :  { %16 = vsyncpa [#allocation3], 0 }
   0x9   :  { %18 = vsyncpa [#allocation3 + $0x1], 0 }
   0xa   :  { %19 = vsyncpa [#allocation6], 0 }
   0xb   :  { %21 = vsyncpa [#allocation6 + $0x1], 0 }
   0xc   :  { %22 = vsyncpa [#allocation9], 0 }
   0xd   :  { %23 = vsyncpa [#allocation12], 0 }
   0xe   :  { %24 = vsyncpa [#allocation4], 0 }
   0xf   :  { %26 = vsyncpa [#allocation4 + $0x1], 0  ;;  %s2384_s17 = smov 0   ;;  %s2386_s18 = smov 0  }
  0x10   :  { %s2388_s19 = smov 0   ;;  %s2390_s20 = smov 0  }
  0x11 LB: > { %2893 = sst [smem:[#allocation20_spill]] %s2291_s17  ;;  %s2305_s21 = smov [#allocation8]   ;;  %s2303_s20 = sphi %s2390_s20, %s2935_s20   ;;  %s2299_s19 = sphi %s2388_s19, %s2939_s19   ;;  %s2295_s18 = sphi %s2386_s18, %s2938_s18   ;;  %s2291_s17 = sphi %s2384_s17, %s2937_s17  }
  0x12   : > { %2894 = sst [smem:[#allocation21_spill]] %s2303_s20  ;;  %s321_s22 = sshll.u32 %s2305_s21, 4  ;;  %s2410_s22 = int_to_ptr.vmem [resolvable:$true] %s321_s22 }
  0x13   : > { %s2405_s23 = sadd.s32 4294967295, %s2303_s20   ;;  %p1710_p0 = scmp.ge.s32.totalorder %s2303_s20, 1 }
  0x14   : > { %p2872_p1 = scmp.eq.s32.totalorder %s2405_s23, 0  ;;  %p309_p2 = scmp.lt.s32.totalorder %s2303_s20, 3 }
  0x15   : > { %s2306_s25 = smov [#allocation11]   ;;  %s2897_s3 = sld [smem:[#allocation27_spill]] }
  0x16   : > { %p2412_p3 = pnand %p1710_p0, %p309_p2  ;;  %s353_s26 = sshll.u32 %s2306_s25, 4  ;;  %s2425_s26 = int_to_ptr.vmem [resolvable:$true] %s353_s26 }
  0x18   : > { %s2895_s24 = scalar_select %p2412_p3, 1, 0 }
  0x19   : > { %p1923_p5 = pneg %p2412_p3 }
  0x1b   : > { %p2421_p6 = pnand %p1923_p5, %p2872_p1  ;;  %s2023_s30 = scalar_lea.hbm %s2897_s3, 512 }
  0x1c   : > { %p2024_p7 = scmp.ne.s32.totalorder %s2897_s3, %s2023_s30  ;;  %p2030_p11 = scmp.lt.u32.totalorder %s2023_s30, %s2897_s3 }
  0x1d   : > { %s2896_s27 = scalar_select %p2421_p6, 1, 0 }
  0x1e   : > { %p2435_p8 = pneg %p2421_p6 }
  0x20   : > { %s2898_s14 = scalar_select %p2435_p8, 1, 0 }
  0x21   : > { %p2026_p9 = pnand %p2435_p8, %p2024_p7 }
  0x23   : > { %p2027_p10 = pneg %p2026_p9 }
  0x25   : > { %p2032_p12 = pnand %p2030_p11, %p2027_p10 }
  0x27   : > { %2035 = shalt.err (!%p2032_p12)
}
  0x28   : > { %s2036_s21 = scalar_lea.vmem %s2410_s22, 512  ;;  %p2044_p5 = scmp.lt.s32.totalorder %s2410_s22, %s2410_s22 }
  0x29   : > { %p2037_p13 = scmp.ne.s32.totalorder %s2410_s22, %s2036_s21  ;;  %p2045_p4 = scmp.lt.s32.totalorder %s2036_s21, %s2036_s21 }
  0x2b   : > { %p2039_p0 = pnand %p2037_p13, %p2435_p8  ;;  %p2046_p7 = por %p2045_p4, %p2044_p5 }
  0x2d   : > { %p2040_p2 = pneg %p2039_p0 }
  0x2f   : > { %p2047_p9 = pnand %p2046_p7, %p2040_p2 }
  0x31   : > { %2050 = shalt.err (!%p2047_p9)
}
  0x32   : > { %s2864_s25 = smov 128   ;;  %s2865_s28 = smov 8  }
  0x33   : > { %1926 = dma.hbm_to_vmem [thread:$0]  (!%p2421_p6), %s2897_s3, 512, %s2410_s22, [#allocation9], %s2864_s25, %s2864_s25, %s2865_s28  }
  0x34   : > { %s2899_s7 = sld [smem:[#allocation29_spill]] }
  0x3a   : > { %s2051_s15 = scalar_lea.hbm %s2899_s7, 512 }
  0x3b   : > { %p2052_p4 = scmp.ne.s32.totalorder %s2899_s7, %s2051_s15  ;;  %p2058_p12 = scmp.lt.u32.totalorder %s2051_s15, %s2899_s7 }
  0x3d   : > { %p2054_p10 = pnand %p2052_p4, %p2435_p8 }
  0x3f   : > { %p2055_p11 = pneg %p2054_p10 }
  0x41   : > { %p2060_p13 = pnand %p2058_p12, %p2055_p11 }
  0x43   : > { %2063 = shalt.err (!%p2060_p13)
}
  0x44   : > { %s2064_s22 = scalar_lea.vmem %s2425_s26, 512  ;;  %p2072_p7 = scmp.lt.s32.totalorder %s2425_s26, %s2425_s26 }
  0x45   : > { %p2065_p0 = scmp.ne.s32.totalorder %s2425_s26, %s2064_s22  ;;  %p2073_p9 = scmp.lt.s32.totalorder %s2064_s22, %s2064_s22 }
  0x47   : > { %p2067_p2 = pnand %p2065_p0, %p2435_p8  ;;  %p2074_p4 = por %p2073_p9, %p2072_p7 }
  0x49   : > { %p2068_p5 = pneg %p2067_p2 }
  0x4b   : > { %p2075_p10 = pnand %p2074_p4, %p2068_p5 }
  0x4d   : > { %2078 = shalt.err (!%p2075_p10)
}
  0x4e   : > { %1932 = dma.hbm_to_vmem [thread:$0]  (!%p2421_p6), %s2899_s7, 512, %s2425_s26, [#allocation12], %s2864_s25, %s2864_s25, %s2865_s28  }
  0x4f   : > { %s1709_s29 = sadd.s32 4294967294, %s2303_s20   ;;  %s2487_s30 = sadd.s32 1, %s2303_s20  }
  0x50   : > { %2900 = sst [smem:[#allocation22_spill]] %s2487_s30  ;;  %s36_s12 = ssub.s32 %s2303_s20, %s2487_s30 }
  0x51   : > { %s39_s13 = sadd.s32 1, %s2299_s19  ;;  %p37_p11 = scmp.eq.s32.totalorder %s36_s12, 0 }
  0x52   : > { %p46_p12 = scmp.ne.s32.totalorder %s2299_s19, %s2295_s18  ;;  %p47_p13 = scmp.eq.s32.totalorder %s2303_s20, 0 }
  0x53   : > { %p52_p0 = scmp.ne.s32.totalorder %s2295_s18, %s2291_s17  ;;  %p296_p7 = scmp.eq.s32.totalorder %s2405_s23, 1 }
  0x54   : > { %s2498_s15 = scalar_select %p37_p11, %s2299_s19, %s39_s13  }
  0x55   : > { %p48_p2 = por %p47_p13, %p46_p12  ;;  %p2502_p5 = por %p2872_p1, %p52_p0 }
  0x56   : > { %2901 = sst [smem:[#allocation23_spill]] %s2498_s15  ;;  %p302_p9 = scmp.eq.s32.totalorder %s1709_s29, 1 }
  0x57   : > { %s2902_s16 = scalar_select %p2502_p5, 1, 0 }
  0x58   : > { %p1954_p4 = scmp.lt.s32.totalorder %s2303_s20, 2  ;;  %s2866_s26 = sand.u32 1, %s2299_s19  }
  0x59   : > { %p2509_p10 = por %p296_p7, %p46_p12  ;;  %p2513_p3 = por %p302_p9, %p52_p0 }
  0x5a   : > { %s2519_s10 = sshll.u32 %s2866_s26, 3  ;;  %s2522_s11 = sshll.u32 %s2303_s20, 7 }
  0x5b   : > { %s2903_s21 = scalar_select %p2509_p10, 1, 0 }
  0x5c   : > { %s2905_s22 = scalar_select %p2513_p3, 1, 0 }
  0x5d   : > { %2904 = sst [smem:[#allocation24_spill]] %s2903_s21  ;;  %p2524_p11 = pnand %p1954_p4, %p48_p2 }
  0x5e   : > { %2906 = sst [smem:[#allocation25_spill]] %s2905_s22  ;;  %s402_s29 = sand.u32 1, %s2303_s20  }
  0x5f   : > { %s2907_s12 = scalar_select %p2524_p11, 1, 0 }
  0x60   : > { %s2908_s1 = sld [smem:[#allocation26_spill]]  ;;  %s406_s26 = scalar_lea.vmem [#allocation5], %s2519_s10 }
  0x61   : > { %s413_s3 = sshll.u32 %s406_s26, 4  ;;  %s2309_s7 = smov [#allocation10]   ;;  %s2536_s3 = int_to_ptr.vmem [resolvable:$true] %s413_s3 }
  0x62   : > { %s2538_s15 = sshll.u32 %s2309_s7, 4  ;;  %s2540_s30 = scalar_lea.sflag [#allocation6], %s402_s29  ;;  %s338_s15 = int_to_ptr.vmem [resolvable:$true] %s2538_s15 }
  0x63   : > { %p2546_p13 = pneg %p2524_p11 }
  0x65   : > { %s2909_s25 = scalar_select %p2546_p13, 1, 0 }
  0x66   : > { %s2533_s28 = scalar_lea.hbm %s2908_s1, %s2522_s11  ;;  %s2084_s20 = scalar_lea.hbm %s2908_s1, 256 }
  0x67   : > { %s2079_s22 = scalar_lea.hbm %s2533_s28, 128  ;;  %p2085_p7 = scmp.lt.u32.totalorder %s2533_s28, %s2908_s1 }
  0x68   : > { %p2080_p12 = scmp.ne.s32.totalorder %s2533_s28, %s2079_s22  ;;  %p2086_p9 = scmp.lt.u32.totalorder %s2084_s20, %s2079_s22 }
  0x69   : > { %p2088_p1 = scmp.lt.u32.totalorder %s2079_s22, %s2533_s28 }
  0x6a   : > { %p2082_p0 = pnand %p2546_p13, %p2080_p12  ;;  %p2087_p4 = por %p2086_p9, %p2085_p7 }
  0x6c   : > { %p2083_p2 = pneg %p2082_p0  ;;  %p2089_p3 = por %p2088_p1, %p2087_p4 }
  0x6e   : > { %p2090_p10 = pnand %p2089_p3, %p2083_p2 }
  0x70   : > { %2093 = shalt.err (!%p2090_p10)
}
  0x71   : > { %s2094_s29 = scalar_lea.vmem %s2536_s3, 128  ;;  %s2310_s13 = smov [#allocation5]  }
  0x72   : > { %p2095_p12 = scmp.ne.s32.totalorder %s2536_s3, %s2094_s29  ;;  %s2099_s26 = sshll.u32 %s2310_s13, 4  ;;  %s2100_s26 = int_to_ptr.vmem [resolvable:$false] %s2099_s26 }
  0x73   : > { %s2101_s17 = scalar_lea.vmem %s2100_s26, 256  ;;  %p2102_p6 = scmp.lt.s32.totalorder %s2536_s3, %s2100_s26 }
  0x74   : > { %p2097_p0 = pnand %p2095_p12, %p2546_p13  ;;  %p2103_p8 = scmp.lt.s32.totalorder %s2101_s17, %s2094_s29 }
  0x76   : > { %p2098_p5 = pneg %p2097_p0  ;;  %p2104_p7 = por %p2103_p8, %p2102_p6 }
  0x78   : > { %p2105_p9 = pnand %p2104_p7, %p2098_p5 }
  0x7a   : > { %2108 = shalt.err (!%p2105_p9)
}
  0x7b   : > { %1942 = dma.hbm_to_vmem [thread:$0]  (!%p2524_p11), %s2533_s28, 128, %s2536_s3, %s2540_s30  }
  0x7c   : > { %s2109_s7 = scalar_lea.hbm %s2855_s5, 512  ;;  %p2910_p3 = scmp.ne.s32.totalorder %s2898_s14, 0 }
  0x7d   : > { %p2110_p1 = scmp.ne.s32.totalorder %s2855_s5, %s2109_s7  ;;  %p2116_p5 = scmp.lt.u32.totalorder %s2109_s7, %s2855_s5 }
  0x7f   : > { %p2112_p6 = pnand %p2110_p1, %p2910_p3 }
  0x81   : > { %p2113_p8 = pneg %p2112_p6 }
  0x83   : > { %p2118_p10 = pnand %p2116_p5, %p2113_p8 }
  0x85   : > { %2121 = shalt.err (!%p2118_p10)
}
  0x86   : > { %s2122_s17 = scalar_lea.vmem %s338_s15, 512  ;;  %p2130_p0 = scmp.lt.s32.totalorder %s338_s15, %s338_s15 }
  0x87   : > { %p2123_p2 = scmp.ne.s32.totalorder %s338_s15, %s2122_s17  ;;  %p2131_p7 = scmp.lt.s32.totalorder %s2122_s17, %s2122_s17 }
  0x89   : > { %p2125_p4 = pnand %p2123_p2, %p2910_p3  ;;  %p2132_p9 = por %p2131_p7, %p2130_p0 }
  0x8b   : > { %p2126_p12 = pneg %p2125_p4 }
  0x8d   : > { %p2133_p11 = pnand %p2132_p9, %p2126_p12 }
  0x8f   : > { %2136 = shalt.err (!%p2133_p11)
}
  0x90   : > { %p2911_p1 = scmp.ne.s32.totalorder %s2896_s27, 0  ;;  %s2912_s1 = smov 8  }
  0x91   : > { %s2913_s3 = smov 128   ;;  %s2311_s22 = smov [#allocation13]  }
  0x92   : > { %1929 = dma.hbm_to_vmem [thread:$0]  (!%p2911_p1), %s2855_s5, 512, %s338_s15, [#allocation9], %s2913_s3, %s2913_s3, %s2912_s1  }
  0x93   : > { %s367_s7 = sshll.u32 %s2311_s22, 4  ;;  %s2137_s26 = scalar_lea.hbm %s2858_s8, 16  ;;  %s368_s7 = int_to_ptr.vmem [resolvable:$true] %s367_s7 }
  0x94   : > { %p2138_p11 = scmp.ne.s32.totalorder %s2858_s8, %s2137_s26  ;;  %p2144_p5 = scmp.lt.u32.totalorder %s2137_s26, %s2858_s8 }
  0x96   : > { %p2140_p6 = pnand %p2138_p11, %p2910_p3 }
  0x98   : > { %p2141_p8 = pneg %p2140_p6 }
  0x9a   : > { %p2146_p10 = pnand %p2144_p5, %p2141_p8 }
  0x9c   : > { %2149 = shalt.err (!%p2146_p10)
}
  0x9d   : > { %s2150_s15 = scalar_lea.vmem %s368_s7, 16  ;;  %s2157_s1 = scalar_lea.vmem %s368_s7, 32 }
  0x9e   : > { %p2151_p2 = scmp.ne.s32.totalorder %s368_s7, %s2150_s15  ;;  %p2158_p0 = scmp.lt.s32.totalorder %s368_s7, %s368_s7 }
  0x9f   : > { %p2159_p7 = scmp.lt.s32.totalorder %s2157_s1, %s2150_s15 }
  0xa0   : > { %p2153_p4 = pnand %p2151_p2, %p2910_p3 }
  0xa1   : > { %p2160_p9 = por %p2159_p7, %p2158_p0 }
  0xa2   : > { %p2154_p12 = pneg %p2153_p4 }
  0xa4   : > { %p2161_p13 = pnand %p2160_p9, %p2154_p12 }
  0xa6   : > { %2164 = shalt.err (!%p2161_p13)
}
  0xa7   : > { %1935 = dma.hbm_to_vmem [thread:$0]  (!%p2911_p1), %s2858_s8, 16, %s368_s7, [#allocation12]  }
  0xa8   : > { %s2614_s14 = scalar_lea.hbm %s2850_s0, %s2522_s11  ;;  %s388_s28 = scalar_lea.vmem [#allocation2], %s2519_s10 }
  0xa9   : > { %s395_s20 = sshll.u32 %s388_s28, 4  ;;  %s2914_s27 = sand.u32 1, %s2299_s19   ;;  %s396_s20 = int_to_ptr.vmem [resolvable:$true] %s395_s20 }
  0xaa   : > { %s385_s22 = scalar_lea.sflag [#allocation3], %s2914_s27  ;;  %s2165_s13 = scalar_lea.hbm %s2614_s14, 128 }
  0xab   : > { %p2166_p13 = scmp.ne.s32.totalorder %s2614_s14, %s2165_s13  ;;  %p2915_p3 = scmp.ne.s32.totalorder %s2909_s25, 0 }
  0xac   : > { %s2170_s26 = scalar_lea.hbm %s2850_s0, 256  ;;  %p2171_p1 = scmp.lt.u32.totalorder %s2614_s14, %s2850_s0 }
  0xad   : > { %p2168_p11 = pnand %p2166_p13, %p2915_p3  ;;  %p2172_p8 = scmp.lt.u32.totalorder %s2170_s26, %s2165_s13 }
  0xae   : > { %p2174_p10 = scmp.lt.u32.totalorder %s2165_s13, %s2614_s14 }
  0xaf   : > { %p2169_p6 = pneg %p2168_p11  ;;  %p2173_p5 = por %p2172_p8, %p2171_p1 }
  0xb1   : > { %p2175_p2 = por %p2174_p10, %p2173_p5 }
  0xb3   : > { %p2176_p4 = pnand %p2175_p2, %p2169_p6 }
  0xb5   : > { %2179 = shalt.err (!%p2176_p4)
}
  0xb6   : > { %s2180_s1 = scalar_lea.vmem %s396_s20, 128  ;;  %s2312_s21 = smov [#allocation2]  }
  0xb7   : > { %p2181_p12 = scmp.ne.s32.totalorder %s396_s20, %s2180_s1  ;;  %s2185_s3 = sshll.u32 %s2312_s21, 4  ;;  %s2186_s3 = int_to_ptr.vmem [resolvable:$false] %s2185_s3 }
  0xb8   : > { %s2187_s4 = scalar_lea.vmem %s2186_s3, 256  ;;  %p2188_p9 = scmp.lt.s32.totalorder %s396_s20, %s2186_s3 }
  0xb9   : > { %p2183_p0 = pnand %p2181_p12, %p2915_p3  ;;  %p2189_p13 = scmp.lt.s32.totalorder %s2187_s4, %s2180_s1 }
  0xbb   : > { %p2184_p7 = pneg %p2183_p0  ;;  %p2190_p11 = por %p2189_p13, %p2188_p9 }
  0xbd   : > { %p2191_p1 = pnand %p2190_p11, %p2184_p7 }
  0xbf   : > { %2194 = shalt.err (!%p2191_p1)
}
  0xc0   : > { %p2916_p8 = scmp.ne.s32.totalorder %s2907_s12, 0  ;;  %s2640_s27 = scalar_lea.hbm %s2852_s2, %s2522_s11 }
  0xc1   : > { %s424_s13 = scalar_lea.vmem [#allocation7], %s2519_s10  ;;  %s2195_s29 = scalar_lea.hbm %s2640_s27, 128 }
  0xc2   : > { %1939 = dma.hbm_to_vmem [thread:$0]  (!%p2916_p8), %s2614_s14, 128, %s396_s20, %s385_s22  }
  0xc3   : > { %s431_s7 = sshll.u32 %s424_s13, 4  ;;  %p2196_p6 = scmp.ne.s32.totalorder %s2640_s27, %s2195_s29  ;;  %s432_s7 = int_to_ptr.vmem [resolvable:$true] %s431_s7 }
  0xc4   : > { %s2200_s14 = scalar_lea.hbm %s2852_s2, 256  ;;  %p2201_p2 = scmp.lt.u32.totalorder %s2640_s27, %s2852_s2 }
  0xc5   : > { %p2198_p5 = pnand %p2196_p6, %p2915_p3  ;;  %p2202_p4 = scmp.lt.u32.totalorder %s2200_s14, %s2195_s29 }
  0xc6   : > { %p2204_p0 = scmp.lt.u32.totalorder %s2195_s29, %s2640_s27 }
  0xc7   : > { %p2199_p10 = pneg %p2198_p5  ;;  %p2203_p12 = por %p2202_p4, %p2201_p2 }
  0xc9   : > { %p2205_p7 = por %p2204_p0, %p2203_p12 }
  0xcb   : > { %p2206_p9 = pnand %p2205_p7, %p2199_p10 }
  0xcd   : > { %2209 = shalt.err (!%p2206_p9)
}
  0xce   : > { %s2210_s10 = scalar_lea.vmem %s432_s7, 128  ;;  %s2313_s11 = smov [#allocation7]  }
  0xcf   : > { %p2211_p13 = scmp.ne.s32.totalorder %s432_s7, %s2210_s10  ;;  %s2215_s15 = sshll.u32 %s2313_s11, 4  ;;  %s2216_s15 = int_to_ptr.vmem [resolvable:$false] %s2215_s15 }
  0xd0   : > { %s2217_s1 = scalar_lea.vmem %s2216_s15, 256  ;;  %p2218_p6 = scmp.lt.s32.totalorder %s432_s7, %s2216_s15 }
  0xd1   : > { %p2213_p11 = pnand %p2211_p13, %p2915_p3  ;;  %p2219_p5 = scmp.lt.s32.totalorder %s2217_s1, %s2210_s10 }
  0xd3   : > { %p2214_p1 = pneg %p2213_p11  ;;  %p2220_p8 = por %p2219_p5, %p2218_p6 }
  0xd5   : > { %p2221_p2 = pnand %p2220_p8, %p2214_p1 }
  0xd7   : > { %2224 = shalt.err (!%p2221_p2)
}
  0xd8   : > { %p2917_p4 = scmp.ne.s32.totalorder %s2907_s12, 0  ;;  %p2918_p10 = scmp.ne.s32.totalorder %s2895_s24, 0 }
  0xd9   : > { %s2664_s25 = sand.u32 (!%p2918_p10), 1, %s2295_s18   ;;  %p2919_p3 = scmp.ne.s32.totalorder (!%p2918_p10), %s2902_s16, 0 }
  0xda   : > { %1945 = dma.hbm_to_vmem [thread:$0]  (!%p2917_p4), %s2640_s27, 128, %s432_s7, %s2540_s30  }
  0xdb   : > { %440 = sbr.rel (%p2918_p10) target bundleno = 2140 (0x85c), region = 64  ;;  %s2667_s21 = sshll.u32 (!%p2918_p10), %s2664_s25, 3 }
  0xdc   : > { %s443_s3 = scalar_lea.sflag (!%p2918_p10), [#allocation3], %s2664_s25  ;;  %s446_s4 = scalar_lea.vmem (!%p2918_p10), [#allocation2], %s2667_s21 }
  0xe2   : > { %2270 = dma.done.wait (%p2919_p3), %s443_s3, 128  }
  0xe3   : > { %2272 = vsyncadd (%p2919_p3), %s443_s3, 4294967168  ;;  %s451_s24 = sand.u32 1, %s2405_s23   ;;  %s455_s12 = scalar_lea.vmem [#allocation5], %s2667_s21 }
  0xe4   : > { %s452_s30 = scalar_lea.sflag [#allocation6], %s451_s24 }
  0xe5   : > { %2274 = dma.done.wait (%p2919_p3), %s452_s30, 256  }
  0xe6   : > { %2276 = vsyncadd (%p2919_p3), %s452_s30, 4294967040  ;;  %s464_s9 = scalar_lea.vmem [#allocation7], %s2667_s21  ;;  %p2920_p8 = scmp.eq.s32.totalorder %s2405_s23, 0 }
  0xe8   : > { %2278 = dma.done.wait (%p2920_p8), [#allocation9], 1024   ;;  %p2921_p12 = pmov %p2920_p8 }
  0xe9   : > { %p2922_p0 = pmov %p2920_p8 }
  0xea   : > { %2280 = vsyncadd (%p2921_p12), [#allocation9], 4294966272 }
  0xeb   : > { %2282 = dma.done.wait (%p2922_p0), [#allocation12], 528   ;;  %p2923_p7 = pmov %p2922_p0 }
  0xec   : > { %v2314_v0 = vmov 0.0|0.0   ;;  %vm2315_vm0 = vmmov 0   ;;  %v2316_v1 = vmov 0.0   ;;  %v617_v2 = vld [vmem:[#allocation10] sm:$0xff]  ;;  %v618_v3 = vld [vmem:[#allocation10 + $0x8] sm:$0xff]  ;;  %v619_v7 = vld [vmem:[#allocation10 + $0x10] sm:$0xff] }
  0xed   : > { %2284 = vsyncadd (%p2923_p7), [#allocation12], 4294966768  ;;  %1881 = vmatprep.subr.bf16.mxu1 %v2314_v0  ;;  %1875 = vmatprep.subr.bf16.mxu0 %v2314_v0  ;;  %v532_v4 = vld [vmem:[#allocation8] sm:$0xff]  ;;  %v1882_v5 = vpack.c.bf16 %v618_v3, %v617_v2  ;;  %v533_v6 = vld [vmem:[#allocation8 + $0x8] sm:$0xff]  ;;  %vm543_vm1 = vcmask 261120   ;;  %s2924_s7 = sld [smem:[#allocation28_spill]] }
  0xee   : > { %1810 = vmatprep.mubr.msk.f32.mxu1 %vm2315_vm0, %v2316_v1  ;;  %1799 = vmatprep.mubr.msk.f32.mxu0 %vm2315_vm0, %v2316_v1  ;;  %v620_v8 = vld [vmem:[#allocation10 + $0x18] sm:$0xff]  ;;  %v1876_v9 = vpack.c.bf16 %v533_v6, %v532_v4  ;;  %v534_v10 = vld [vmem:[#allocation8 + $0x10] sm:$0xff]  ;;  %v530_v14 = vld [vmem:[%s455_s12] sm:$0xff]  ;;  %vm785_vm2 = vcmask 64512   ;;  %s2317_s29 = smov 120   ;;  %s2318_s26 = smov 112  }
  0xef   : > { %v535_v11 = vld [vmem:[#allocation8 + $0x18] sm:$0xff]  ;;  %1883 = vmatpush3.bf16.msra.mxu1 %v1882_v5  ;;  %v1885_v12 = vpack.c.bf16 %v620_v8, %v619_v7  ;;  %v1733_v16 = vld [vmem:[%s2856_s6] ss:$0 sm:$0xff]  ;;  %s2319_s17 = smov 104   ;;  %v701_v24 = vld [vmem:[#allocation11] sm:$0xff]  ;;  %s2925_s22 = sld [smem:[#allocation30_spill]] }
  0xf0   : > { %1877 = vmatpush3.bf16.msra.mxu0 %v1876_v9  ;;  %1884 = vmatprep.subr.bf16.mxu1 %v2314_v0  ;;  %v1879_v13 = vpack.c.bf16 %v535_v11, %v534_v10  ;;  %v529_v15 = vld [vmem:[%s446_s4] sm:$0xff]  ;;  %v702_v25 = vld [vmem:[#allocation11 + $0x8] sm:$0xff]  ;;  %v1735_v39 = vld [vmem:[#allocation13] ss:$0 sm:$0xff]  ;;  %s2320_s24 = smov 8   ;;  %s2321_s30 = smov 16  }
  0xf1   : > { %1878 = vmatprep.subr.bf16.mxu0 %v2314_v0  ;;  %v703_v26 = vld [vmem:[#allocation11 + $0x10] sm:$0xff]  ;;  %v1888_v27 = vpack.c.bf16 %v702_v25, %v701_v24  ;;  %v704_v28 = vld [vmem:[#allocation11 + $0x18] sm:$0xff]  ;;  %s2322_s12 = smov 24   ;;  %vm1455_vm3 = vcmask 130048   ;;  %vm1457_vm4 = vcmask 195584   ;;  %s2927_s27 = sld [smem:[#allocation31_spill]] }
  0xf2   : > { %v1891_v29 = vpack.c.bf16 %v704_v28, %v703_v26  ;;  %v531_v30 = vld [vmem:[%s464_s9] sm:$0xff]  ;;  %s2926_s9 = sld [smem:[#allocation24_spill]]  ;;  %s1752_s13 = sshll.u32 %s2405_s23, 7 }
  0xf3   : > { %1886 = vmatpush3.bf16.msra.mxu1 %v1885_v12  ;;  %v1731_v17 = vld [vmem:[%s2924_s7] ss:$0 sm:$0xff]  ;;  %s528_s7 = scalar_lea.vmem [#allocation14], %s2667_s21  ;;  %s2928_s14 = sld [smem:[#allocation32_spill]] }
  0xf4   : > { %1880 = vmatpush3.bf16.msra.mxu0 %v1879_v13  ;;  %1824 = vmatprep.subr.mxu1 %v2316_v1  ;;  %s1545_s10 = scalar_lea.sflag [#allocation4], %s2664_s25  ;;  %s2323_s23 = smov [#allocation14]  }
  0xf5   : > { %1887 = vmatprep.subr.bf16.mxu0 %v2314_v0  ;;  %v1459_v28 = vld [vmem:[%s2925_s22] sm:$0xff]  ;;  %s2229_s21 = sshll.u32 %s2323_s23, 4  ;;  %s2230_s21 = int_to_ptr.vmem [resolvable:$false] %s2229_s21 }
  0xf6   : > { %1811 = vmatmul.mubr.msk.f32.vlgmr.msra.gmra.mrb[0].mxu1 %vm543_vm1, %v530_v14  ;;  %s2231_s15 = scalar_lea.vmem %s2230_s21, 256 }
  0xf7   : > { %1800 = vmatmul.mubr.msk.f32.vlgmr.msra.gmra.mrb[0].mxu0 %vm543_vm1, %v529_v15  ;;  %1826 = vmatprep.mubr.msk.f32.mxu1 %vm2315_vm0, %v2316_v1 }
  0xf8   : > { %1821 = vmatprep.mubr.msk.f32.mxu0 %vm2315_vm0, %v2316_v1  ;;  %1889 = vmatpush3.bf16.msra.mxu0 %v1888_v27  ;;  %p2929_p13 = scmp.ne.s32.totalorder %s2926_s9, 0 }
  0xf9   : > { %1890 = vmatprep.subr.bf16.mxu0 %v2314_v0  ;;  %s2805_s20 = scalar_lea.hbm %s2928_s14, %s1752_s13 }
  0xfc   : > { %1892 = vmatpush3.bf16.msra.mxu0 %v1891_v29  ;;  %v1460_v29 = vld [vmem:[%s2925_s22 + $0x8] sm:$0xff] }
  0xfd   : > { %1844 = vmatprep.subr.mxu0 %v2316_v1 }
  0xff   : > { %1822 = vmatmul.mubr.msk.f32.vlgmr.msra.gmra.mrb[2].mxu0 %vm543_vm1, %v531_v30  ;;  %v1894_v30 = vpack.c.bf16 %v1460_v29, %v1459_v28 }
 0x100   : > { %1846 = vmatprep.mubr.msk.f32.mxu0 %vm2315_vm0, %v2316_v1 }
 0x1c9   : > { %v697_v18 = vpop.f32.mrb[0].mxu1 }
 0x1ca   : > { %v698_v19 = vadd.f32 %v1733_v16, %v697_v18  ;;  %v1812_v20 = vpop.f32.mrb[1].mxu1  ;;  %v613_v21 = vpop.f32.mrb[0].mxu0 }
 0x1cb   : > { %v614_v22 = vadd.f32 %v1731_v17, %v613_v21  ;;  %v1801_v23 = vpop.f32.mrb[1].mxu0 }
 0x1cc   : > { %948 = vrot.lane.b32.xlu1 %v698_v19, %s2317_s29  ;;  %1825 = vmatpush3.xpose.msk.msra.mxu1 %vm785_vm2, %v698_v19 }
 0x1cd   : > { %1829 = vmatprep.subr.mxu1 %v2316_v1 }
 0x1cf   : > { %1827 = vmatmul.mubr.msk.f32.vlgmr.msra.gmra.mrb[2].mxu1 %vm785_vm2, %v614_v22 }
 0x1d0   : > { %946 = vrot.lane.b32.xlu1 %v614_v22, %s2317_s29  ;;  %1831 = vmatprep.mubr.msk.f32.mxu1 %vm2315_vm0, %v2316_v1 }
 0x1d2   : > { %v781_v40 = vpop.f32.mrb[2].mxu0 }
 0x1d3   : > { %v2735_v41 = vadd.f32 %v1735_v39, %v781_v40  ;;  %v1823_v42 = vpop.f32.mrb[3].mxu0 }
 0x1d4   : > { %1112 = vrot.lane.b32.xlu1 %v614_v22, %s2318_s26 }
 0x1d5   : > { %1830 = vmatpush3.msra.mxu1 %v2735_v41 }
 0x1d6   : > { %1834 = vmatprep.subr.mxu1 %v2316_v1 }
 0x1d8   : > { %1279 = vrot.lane.b32.xlu1 %v698_v19, %s2319_s17 }
 0x1dc   : > { %1277 = vrot.lane.b32.xlu1 %v614_v22, %s2319_s17 }
 0x23e   : > { %v949_v43 = vpop.permute.xlu1 %948 }
 0x242   : > { %v947_v44 = vpop.permute.xlu1 %946 }
 0x246   : > { %v1113_v45 = vpop.permute.xlu1 %1112 }
 0x24a   : > { %v1280_v48 = vpop.permute.xlu1 %1279 }
 0x24e   : > { %v1278_v50 = vpop.permute.xlu1 %1277 }
 0x2a2   : > { %v858_v31 = vpop.f32.mrb[2].mxu1 }
 0x2a3   : > { %v1828_v32 = vpop.f32.mrb[3].mxu1  ;;  %v862_v33 = vsel %vm785_vm2, %v858_v31, -inf }
 0x2a4   : > { %863 = vmax.xlane.f32.xlu0 %v862_v33 }
 0x331   : > { %v864_v34 = vpop.xlane.xlu0 %863 }
 0x332   : > { %v865_v35 = vsub.f32 %v858_v31, %v864_v34  ;;  %v1461_v31 = vld [vmem:[%s2925_s22 + $0x10] sm:$0xff] }
 0x334   : > { %v866_v36 = vmul.f32 1.442695, %v865_v35 }
 0x336   : > { %2007 = vpow2.f32 %v866_v36 }
 0x340   : > { %v2008_v37 = vpop.eup %2007 }
 0x341   : > { %v868_v38 = vsel %vm785_vm2, %v2008_v37, 0.0 }
 0x342   : > { %869 = vadd.xlane.f32.xlu0 %v868_v38 }
 0x358   : > { %1114 = vrot.lane.b32.xlu0 %v698_v19, %s2318_s26 }
 0x3cf   : > { %v870_v46 = vpop.xlane.xlu0 %869 }
 0x3d0   : > { %2009 = vrcp.f32 %v870_v46 }
 0x3d3   : > { %v1115_v47 = vpop.permute.xlu0 %1114 }
 0x3d4   : > { %1845 = vmatpush3.xpose.msk.msra.mxu0 %vm785_vm2, %v1115_v47 }
 0x3d5   : > { %1854 = vmatprep.subr.mxu0 %v2316_v1 }
 0x3d7   : > { %1847 = vmatmul.mubr.msk.f32.vlgmr.msra.gmra.mrb[4].mxu0 %vm785_vm2, %v1113_v45 }
 0x3d8   : > { %1855 = vmatpush3.xpose.msk.msra.mxu0 %vm785_vm2, %v1280_v48  ;;  %1856 = vmatprep.mubr.msk.f32.mxu0 %vm2315_vm0, %v2316_v1 }
 0x3d9   : > { %1893 = vmatprep.subr.bf16.mxu0 %v2314_v0 }
 0x3da   : > { %v2010_v49 = vpop.eup %2009 }
 0x3db   : > { %v872_v51 = vmul.f32 %v2010_v49, %v2008_v37  ;;  %1857 = vmatmul.mubr.msk.f32.vlgmr.msra.gmra.mrb[6].mxu0 %vm785_vm2, %v1278_v50 }
 0x3dc   : > { %1872 = vmatprep.mubr.msk.f32.mxu0 %vm2315_vm0, %v2316_v1  ;;  %1895 = vmatpush3.bf16.msra.mxu0 %v1894_v30 }
 0x3dd   : > { %1832 = vmatmul.mubr.msk.f32.vlgmr.msra.gmra.mrb[4].mxu1 %vm785_vm2, %v872_v51  ;;  %1896 = vmatprep.subr.bf16.mxu0 %v2314_v0 }
 0x3de   : > { %1835 = vmatpush3.xpose.msk.msra.mxu1 %vm785_vm2, %v949_v43  ;;  %1836 = vmatprep.mubr.msk.f32.mxu1 %vm2315_vm0, %v2316_v1 }
 0x3df   : > { %1839 = vmatprep.subr.mxu1 %v2316_v1 }
 0x3e1   : > { %1837 = vmatmul.mubr.msk.f32.vlgmr.msra.gmra.mrb[6].mxu1 %vm785_vm2, %v947_v44  ;;  %v1749_v44 = vld [vmem:[%s2927_s27] ss:$0 sm:$0xff] }
 0x3e2   : > { %1841 = vmatprep.mubr.msk.f32.mxu1 %vm2315_vm0, %v2316_v1 }
 0x4aa   : > { %v1186_v52 = vpop.f32.mrb[4].mxu0 }
 0x4ab   : > { %v1848_v53 = vpop.f32.mrb[5].mxu0  ;;  %v1190_v54 = vsel %vm785_vm2, %v1186_v52, -inf }
 0x4ac   : > { %1191 = vmax.xlane.f32.xlu0 %v1190_v54 }
 0x4ae   : > { %v1351_v55 = vpop.f32.mrb[6].mxu0 }
 0x4af   : > { %v1858_v56 = vpop.f32.mrb[7].mxu0  ;;  %v1355_v62 = vsel %vm785_vm2, %v1351_v55, -inf }
 0x4b0   : > { %v2759_v57 = vpop.f32.mrb[4].mxu1 }
 0x4b1   : > { %v1833_v58 = vpop.f32.mrb[5].mxu1 }
 0x4b4   : > { %v1020_v59 = vpop.f32.mrb[6].mxu1 }
 0x4b5   : > { %v1838_v60 = vpop.f32.mrb[7].mxu1  ;;  %v1024_v61 = vsel %vm785_vm2, %v1020_v59, -inf }
 0x4b6   : > { %1025 = vmax.xlane.f32.xlu1 %v1024_v61 }
 0x4ba   : > { %1356 = vmax.xlane.f32.xlu1 %v1355_v62 }
 0x539   : > { %v1192_v63 = vpop.xlane.xlu0 %1191 }
 0x53a   : > { %v1193_v2 = vsub.f32 %v1186_v52, %v1192_v63 }
 0x53c   : > { %v1194_v3 = vmul.f32 1.442695, %v1193_v2 }
 0x53e   : > { %2011 = vpow2.f32 %v1194_v3 }
 0x543   : > { %v1026_v4 = vpop.xlane.xlu1 %1025 }
 0x544   : > { %v1027_v12 = vsub.f32 %v1020_v59, %v1026_v4 }
 0x546   : > { %v1028_v13 = vmul.f32 1.442695, %v1027_v12 }
 0x547   : > { %v1357_v5 = vpop.xlane.xlu1 %1356 }
 0x548   : > { %v2012_v6 = vpop.eup %2011  ;;  %v1358_v7 = vsub.f32 %v1351_v55, %v1357_v5 }
 0x549   : > { %v1196_v8 = vsel %vm785_vm2, %v2012_v6, 0.0 }
 0x54a   : > { %v1359_v9 = vmul.f32 1.442695, %v1358_v7  ;;  %1197 = vadd.xlane.f32.xlu0 %v1196_v8 }
 0x54c   : > { %2013 = vpow2.f32 %v1359_v9 }
 0x54d   : > { %2015 = vpow2.f32 %v1028_v13 }
 0x556   : > { %v2014_v10 = vpop.eup %2013 }
 0x557   : > { %v1361_v11 = vsel %vm785_vm2, %v2014_v10, 0.0  ;;  %v2016_v14 = vpop.eup %2015 }
 0x558   : > { %1362 = vadd.xlane.f32.xlu1 %v1361_v11  ;;  %v1030_v15 = vsel %vm785_vm2, %v2016_v14, 0.0 }
 0x560   : > { %1036 = vrot.lane.b32.xlu0 %v2735_v41, %s2317_s29  ;;  %s1558_s29 = sshll.u32 %s528_s7, 4  ;;  %s2807_s29 = int_to_ptr.vmem [resolvable:$true] %s1558_s29 }
 0x561   : > { %s2225_s11 = scalar_lea.vmem %s2807_s29, 128  ;;  %p2232_p6 = scmp.lt.s32.totalorder %s2807_s29, %s2230_s21 }
 0x562   : > { %p2226_p9 = scmp.ne.s32.totalorder %s2807_s29, %s2225_s11  ;;  %p2233_p5 = scmp.lt.s32.totalorder %s2231_s15, %s2225_s11 }
 0x564   : > { %p2227_p11 = pnand %p2226_p9, %p2929_p13  ;;  %p2234_p2 = por %p2233_p5, %p2232_p6 }
 0x566   : > { %p2228_p1 = pneg %p2227_p11 }
 0x568   : > { %p2235_p4 = pnand %p2234_p2, %p2228_p1 }
 0x569   : > { %1201 = vrot.lane.b32.xlu1 %v2735_v41, %s2318_s26 }
 0x58d   : > { %1031 = vadd.xlane.f32.xlu1 %v1030_v15 }
 0x59e   : > { %1366 = vrot.lane.b32.xlu1 %v2735_v41, %s2319_s17 }
 0x5d7   : > { %v1198_v16 = vpop.xlane.xlu0 %1197 }
 0x5db   : > { %v1037_v17 = vpop.permute.xlu0 %1036 }
 0x5dc   : > { %1840 = vmatpush3.msra.mxu1 %v1037_v17 }
 0x5dd   : > { %1849 = vmatprep.subr.mxu1 %v2316_v1 }
 0x5e5   : > { %v1363_v18 = vpop.xlane.xlu1 %1362 }
 0x5e9   : > { %v1202_v19 = vpop.permute.xlu1 %1201 }
 0x61a   : > { %v1032_v20 = vpop.xlane.xlu1 %1031 }
 0x61b   : > { %2017 = vrcp.f32 %v1032_v20 }
 0x61c   : > { %2019 = vrcp.f32 %v1198_v16 }
 0x61d   : > { %2021 = vrcp.f32 %v1363_v18 }
 0x61e   : > { %v1367_v26 = vpop.permute.xlu1 %1366 }
 0x625   : > { %v2018_v21 = vpop.eup %2017 }
 0x626   : > { %v1034_v22 = vmul.f32 %v2018_v21, %v2016_v14  ;;  %v2020_v23 = vpop.eup %2019 }
 0x627   : > { %v1200_v24 = vmul.f32 %v2020_v23, %v2012_v6  ;;  %v2022_v25 = vpop.eup %2021 }
 0x628   : > { %1842 = vmatmul.mubr.msk.f32.vlgmr.msra.gmra.mrb[8].mxu1 %vm785_vm2, %v1034_v22  ;;  %v1365_v27 = vmul.f32 %v2022_v25, %v2014_v10 }
 0x629   : > { %1850 = vmatpush3.msra.mxu1 %v1202_v19  ;;  %1851 = vmatprep.mubr.msk.f32.mxu1 %vm2315_vm0, %v2316_v1 }
 0x62a   : > { %1859 = vmatprep.subr.mxu1 %v2316_v1 }
 0x62c   : > { %1852 = vmatmul.mubr.msk.f32.vlgmr.msra.gmra.mrb[10].mxu1 %vm785_vm2, %v1200_v24 }
 0x62d   : > { %1860 = vmatpush3.msra.mxu1 %v1367_v26  ;;  %1861 = vmatprep.mubr.msk.f32.mxu1 %vm2315_vm0, %v2316_v1  ;;  %v1462_v1 = vld [vmem:[%s2925_s22 + $0x18] sm:$0xff] }
 0x62e   : > { %v1897_v32 = vpack.c.bf16 %v1462_v1, %v1461_v31 }
 0x630   : > { %1862 = vmatmul.mubr.msk.f32.vlgmr.msra.gmra.mrb[12].mxu1 %vm785_vm2, %v1365_v27  ;;  %1898 = vmatpush3.bf16.msra.mxu0 %v1897_v32 }
 0x6fb   : > { %v1108_v33 = vpop.f32.mrb[8].mxu1 }
 0x6fc   : > { %1443 = vrot.lane.b32.xlu0 %v1108_v33, %s2320_s24  ;;  %v1843_v34 = vpop.f32.mrb[9].mxu1 }
 0x6ff   : > { %v1273_v35 = vpop.f32.mrb[10].mxu1 }
 0x700   : > { %1447 = vrot.lane.b32.xlu1 %v1273_v35, %s2321_s30  ;;  %v1853_v36 = vpop.f32.mrb[11].mxu1 }
 0x703   : > { %v1438_v0 = vpop.f32.mrb[12].mxu1 }
 0x704   : > { %1451 = vrot.lane.b32.xlu0 %v1438_v0, %s2322_s12  ;;  %v1863_v37 = vpop.f32.mrb[13].mxu1 }
 0x76e   : > { %v1444_v38 = vpop.permute.xlu0 %1443 }
 0x76f   : > { %v1454_v40 = vsel %vm785_vm2, %v2759_v57, %v1444_v38 }
 0x772   : > { %v1448_v39 = vpop.permute.xlu1 %1447 }
 0x773   : > { %v1456_v41 = vsel %vm1455_vm3, %v1454_v40, %v1448_v39 }
 0x776   : > { %v1452_v42 = vpop.permute.xlu0 %1451 }
 0x777   : > { %v1458_v43 = vsel %vm1457_vm4, %v1456_v41, %v1452_v42 }
 0x778   : > { %1873 = vmatmul.mubr.msk.f32.vlgmr.msra.gmra.mrb[8].mxu0 %vm543_vm1, %v1458_v43 }
 0x84b   : > { %v1539_v45 = vpop.f32.mrb[8].mxu0 }
 0x84c   : > { %v1540_v46 = vadd.f32 %v1749_v44, %v1539_v45  ;;  %v1874_v47 = vpop.f32.mrb[9].mxu0 }
 0x84e   : > { %1543 = vst.msk [vmem:[%s528_s7] sm:$0xff] %vm543_vm1, %v1540_v46 }
 0x84f   : > { %2238 = shalt.err (!%p2235_p4)
}
 0x850   : > { %s2239_s25 = scalar_lea.hbm %s2805_s20, 128  ;;  %s2243_s4 = scalar_lea.hbm %s2928_s14, 256 }
 0x851   : > { %p2240_p10 = scmp.ne.s32.totalorder %s2805_s20, %s2239_s25  ;;  %p2244_p12 = scmp.lt.u32.totalorder %s2805_s20, %s2928_s14 }
 0x852   : > { %p2245_p0 = scmp.lt.u32.totalorder %s2243_s4, %s2239_s25  ;;  %p2247_p9 = scmp.lt.u32.totalorder %s2239_s25, %s2805_s20 }
 0x853   : > { %p2241_p3 = pnand %p2240_p10, %p2929_p13 }
 0x854   : > { %p2246_p7 = por %p2245_p0, %p2244_p12 }
 0x855   : > { %p2242_p8 = pneg %p2241_p3 }
 0x856   : > { %p2248_p11 = por %p2247_p9, %p2246_p7 }
 0x858   : > { %p2249_p1 = pnand %p2248_p11, %p2242_p8 }
 0x85a   : > { %2252 = shalt.err (!%p2249_p1)
}
 0x85b   : > { %1921 = dma.vmem_to_hbm [thread:$0]  (%p2929_p13), %s2807_s29, 128, %s2805_s20, %s1545_s10  }
 0x85c PF: > { %s2930_s12 = sld [smem:[#allocation20_spill]]  ;;  %s2931_s16 = sld [smem:[#allocation25_spill]] }
 0x85d   : > { %s2932_s28 = sld [smem:[#allocation21_spill]] }
 0x862   : > { %s1570_s27 = sand.u32 1, %s2930_s12   ;;  %p2933_p6 = scmp.ne.s32.totalorder %s2931_s16, 0 }
 0x863   : > { %p2934_p5 = scmp.ge.s32.totalorder %s2932_s28, 2  ;;  %s1571_s13 = scalar_lea.sflag [#allocation4], %s1570_s27 }
 0x865   : > { %p1947_p2 = pnand %p2934_p5, %p2933_p6 }
 0x867   : > { %2286 = dma.done.wait (!%p1947_p2), %s1571_s13, 128  }
 0x868   : > { %2288 = vsyncadd (!%p1947_p2), %s1571_s13, 4294967168  ;;  %s2935_s20 = sld [smem:[#allocation22_spill]]  ;;  %s2936_s7 = sld [smem:[#allocation23_spill]] }
 0x869   : > { %s2937_s17 = smov %s2295_s18  ;;  %s2938_s18 = smov %s2299_s19 }
 0x86e   : > { %p29_p4 = scmp.ge.s32.totalorder %s2935_s20, 4   ;;  %s2939_s19 = smov %s2936_s7 }
 0x870   :  { %31 = sbr.rel (!%p29_p4) target bundleno = 17 (0x11), region = 149 }
 0x877   :  { %1576 = vsyncpa [#allocation3], 1 }
 0x878   :  { %1578 = vsyncpa [#allocation3 + $0x1], 1 }
 0x879   :  { %1579 = vsyncpa [#allocation6], 1 }
 0x87a   :  { %1581 = vsyncpa [#allocation6 + $0x1], 1 }
 0x87b   :  { %1582 = vsyncpa [#allocation9], 1 }
 0x87c   :  { %1583 = vsyncpa [#allocation12], 1 }
 0x87d   :  { %1584 = vsyncpa [#allocation4], 1 }
 0x87e   :  { %1586 = vsyncpa [#allocation4 + $0x1], 1 }

</bundles_post_ra>
